<compile_context>
chip_gen: v7x
topology: tpu7x:2x2x1
jax: 0.10.0
libtpu: 0.0.40
codegen_flags: <defaults>
</compile_context>

<pallas_src>
import jax
import jax.numpy as jnp
from jax import lax
from jax.experimental import pallas as pl
from jax.experimental.pallas import tpu as pltpu


# ----------------------------------------------------------------------------
# Generic tiled matmul + bias kernel:  out[i,j] = x[i,:] @ w[:,j] + b[j]
# Used for both the (hoisted) input projection and the vocab projection.
# ----------------------------------------------------------------------------
def matmul_bias_kernel(x_ref, w_ref, b_ref, o_ref):
    acc = jnp.dot(x_ref[...], w_ref[...], preferred_element_type=jnp.float32)
    o_ref[...] = (acc + b_ref[...]).astype(o_ref.dtype)


def _pick_tile(dim, candidates):
    """Largest candidate that evenly divides `dim`; falls back to `dim` itself
    (a full-extent block is always a legal BlockSpec)."""
    for c in candidates:
        if c <= dim and dim % c == 0:
            return c
    return dim


def matmul_bias(x, w, b, *, out_dtype=jnp.float32, mxu_dtype=jnp.bfloat16):
    """(M, K) @ (K, N) + (N,) as a parallel tiled Pallas matmul.

    bf16 MXU operands, f32 accumulation.  K is kept whole per block (fine for
    E / rnn_size-scale K); N is tiled in multiples of 128 so large vocab
    W_dense tiles also fit v7x's 64 MiB VMEM.  Both grid axes are "parallel"
    so tiles pipeline and shard across TensorCores.
    """
    M, K = x.shape
    K2, N = w.shape
    assert K == K2
    tm = _pick_tile(M, (512, 256, 128, 64, 32, 16, 8))
    tn = _pick_tile(N, (1024, 512, 256, 128))

    xq = x.astype(mxu_dtype)
    wq = w.astype(mxu_dtype)
    b2 = b.reshape(1, N).astype(jnp.float32)

    return pl.pallas_call(
        matmul_bias_kernel,
        out_shape=jax.ShapeDtypeStruct((M, N), out_dtype),
        grid=(M // tm, N // tn),
        in_specs=[
            pl.BlockSpec((tm, K), lambda i, j: (i, 0)),
            pl.BlockSpec((K, tn), lambda i, j: (0, j)),
            pl.BlockSpec((1, tn), lambda i, j: (0, j)),
        ],
        out_specs=pl.BlockSpec((tm, tn), lambda i, j: (i, j)),
        compiler_params=pltpu.CompilerParams(
            dimension_semantics=("parallel", "parallel")),
    )(xq, wq, b2)


# ----------------------------------------------------------------------------
# LSTM recurrence kernel: grid = (batch blocks [parallel], time chunks [arb]).
# h/c persist in VMEM scratch across the sequential time axis; they are reset
# at t-block 0 of each batch block.  The per-step body only does h @ W_hh^T
# plus gate nonlinearities; both big projections have been hoisted out.
# ----------------------------------------------------------------------------
def lstm_recurrence_kernel(len_ref, xp_ref, whh_ref, hout_ref, h_ref, c_ref):
    # len_ref : (Bb, 1)      int32  sequence lengths
    # xp_ref  : (Bb, Tc, 4H) f32    precomputed x @ W_ih^T + (b_ih + b_hh)
    # whh_ref : (H, 4H)      bf16   recurrent weights (grid-invariant block)
    # hout_ref: (Bb, Tc, H)  bf16   masked hidden states
    # h_ref/c_ref: (Bb, H) f32 scratch, persist across the time grid axis
    Tc = xp_ref.shape[1]
    H = h_ref.shape[-1]
    tblk = pl.program_id(1)

    @pl.when(tblk == 0)
    def _():
        h_ref[...] = jnp.zeros_like(h_ref)
        c_ref[...] = jnp.zeros_like(c_ref)

    lens = len_ref[...]            # (Bb, 1)
    t0 = tblk * Tc

    h = h_ref[...]
    c = c_ref[...]
    # Tc is a Python int -> fully unrolled chunk with static slices only; the
    # scheduler can overlap the small W_hh matmul with the VPU/EUP gate work,
    # and grid overhead (~0.35 us/step) is amortized over Tc timesteps.
    for s in range(Tc):
        gates = xp_ref[:, s, :] + jnp.dot(
            h.astype(whh_ref.dtype), whh_ref[...],
            preferred_element_type=jnp.float32)            # (Bb, 4H) f32

        # PyTorch gate order: i, f, g, o.
        # When rnn_size is a multiple of 128 these slices are whole-vreg lane
        # chunks (pure VPU/EUP); for smaller H (test size 64) they are masked
        # lane windows -- correct, just slightly slower.
        i_g = jax.nn.sigmoid(gates[:, 0 * H:1 * H])
        f_g = jax.nn.sigmoid(gates[:, 1 * H:2 * H])
        g_g = jnp.tanh(gates[:, 2 * H:3 * H])
        o_g = jax.nn.sigmoid(gates[:, 3 * H:4 * H])

        c = f_g * c + i_g * g_g
        h = o_g * jnp.tanh(c)

        # pack_padded/pad_packed semantics: LSTM output is zero for t >= length
        # (Linear then adds only its bias on padded rows, matching PyTorch).
        hout_ref[:, s, :] = jnp.where(t0 + s < lens, h, 0.0).astype(hout_ref.dtype)

    h_ref[...] = h
    c_ref[...] = c


# ----------------------------------------------------------------------------
# Wrapper: embedding lookup (glue) + 3 pallas_calls.  Batch-first in/out like
# the PyTorch module (batch_first=True): inputs (B, T) -> logits (B, T, V).
# ----------------------------------------------------------------------------
def lstm_lm_forward(inputs, lengths, params, *, time_chunk=None, batch_chunk=None):
    emb, wih, whh, bih, bhh, wd, bd = params
    B, T = inputs.shape
    V, E = emb.shape
    H = whh.shape[1]

    # Embedding gather, batch-major; no activation transposes anywhere below.
    x = jnp.take(emb, inputs, axis=0).astype(jnp.float32)         # (B, T, E)

    # (1) Input projection hoisted out of the recurrence: one big parallel
    #     matmul at full MXU row utilization.  Biases folded in here.
    x_proj = matmul_bias(x.reshape(B * T, E), wih.T, bih + bhh,
                         out_dtype=jnp.float32).reshape(B, T, 4 * H)

    # (2) Sequential recurrence over (batch-block, time-chunk) grid.
    Tc = time_chunk if time_chunk is not None else _pick_tile(T, (32, 16, 8))
    if batch_chunk is not None:
        Bb = batch_chunk
    else:
        # Split the batch only when each block still keeps >=256 MXU rows per
        # step (so the per-step W_hh matmul stays row-bound): neutral on
        # single-core v5e/v6e, and the "parallel" batch axis then shards
        # across the two v7x TensorCores for ~2x on the serial recurrence.
        Bb = _pick_tile(B, (256,)) if B >= 512 else B
    lens = lengths.astype(jnp.int32).reshape(B, 1)
    whh_t = whh.T.astype(jnp.bfloat16)                            # (H, 4H)

    h_out = pl.pallas_call(
        lstm_recurrence_kernel,
        out_shape=jax.ShapeDtypeStruct((B, T, H), jnp.bfloat16),
        grid_spec=pltpu.PrefetchScalarGridSpec(
            num_scalar_prefetch=0,
            grid=(B // Bb, T // Tc),
            in_specs=[
                pl.BlockSpec((Bb, 1), lambda b, t: (b, 0)),          # lengths
                pl.BlockSpec((Bb, Tc, 4 * H), lambda b, t: (b, t, 0)),  # x_proj
                pl.BlockSpec((H, 4 * H), lambda b, t: (0, 0)),        # W_hh^T
            ],
            out_specs=pl.BlockSpec((Bb, Tc, H), lambda b, t: (b, t, 0)),
            scratch_shapes=[
                pltpu.VMEM((Bb, H), jnp.float32),                    # h
                pltpu.VMEM((Bb, H), jnp.float32),                    # c
            ],
        ),
        compiler_params=pltpu.CompilerParams(
            dimension_semantics=("parallel", "arbitrary")),
    )(lens, x_proj, whh_t)

    # (3) Vocab projection hoisted out of the recurrence: parallel tiled matmul
    #     over (B*T, H) rows; V tiled in 128-multiples (fits v7x VMEM).
    #     f32 logits to match the PyTorch module.
    logits = matmul_bias(h_out.reshape(B * T, H), wd.T, bd,
                         out_dtype=jnp.float32).reshape(B, T, V)
    return logits


# ----------------------------------------------------------------------------
# Deterministic parameter init (shapes follow the PyTorch module __init__).
# ----------------------------------------------------------------------------
def init_params(key, vocab_size, rnn_size, embedding_size):
    ks = jax.random.split(key, 7)
    emb = jax.random.normal(ks[0], (vocab_size, embedding_size), jnp.float32)
    emb = emb.at[0].set(0.0)                                  # padding_idx=0
    s = 1.0 / jnp.sqrt(jnp.float32(rnn_size))
    wih = jax.random.uniform(ks[1], (4 * rnn_size, embedding_size), jnp.float32, -s, s)
    whh = jax.random.uniform(ks[2], (4 * rnn_size, rnn_size), jnp.float32, -s, s)
    bih = jax.random.uniform(ks[3], (4 * rnn_size,), jnp.float32, -s, s)
    bhh = jax.random.uniform(ks[4], (4 * rnn_size,), jnp.float32, -s, s)
    wd = jax.random.uniform(ks[5], (vocab_size, rnn_size), jnp.float32, -s, s)
    bd = jax.random.uniform(ks[6], (vocab_size,), jnp.float32, -s, s)
    return (emb, wih, whh, bih, bhh, wd, bd)


# ----------------------------------------------------------------------------
# Pure-JAX f32 reference (mirrors PyTorch semantics) for correctness check.
# ----------------------------------------------------------------------------
def lstm_lm_reference(inputs, lengths, params):
    emb, wih, whh, bih, bhh, wd, bd = params
    B, T = inputs.shape
    H = whh.shape[1]
    x = jnp.take(emb, inputs, axis=0)                        # (B, T, E)

    def step(carry, xt):
        h, c = carry
        gates = xt @ wih.T + h @ whh.T + bih + bhh
        i = jax.nn.sigmoid(gates[:, 0 * H:1 * H])
        f = jax.nn.sigmoid(gates[:, 1 * H:2 * H])
        g = jnp.tanh(gates[:, 2 * H:3 * H])
        o = jax.nn.sigmoid(gates[:, 3 * H:4 * H])
        c_new = f * c + i * g
        h_new = o * jnp.tanh(c_new)
        return (h_new, c_new), h_new

    h0 = jnp.zeros((B, H), jnp.float32)
    _, hs = lax.scan(step, (h0, h0), jnp.transpose(x, (1, 0, 2)))
    hs = jnp.transpose(hs, (1, 0, 2))                        # (B, T, H)
    mask = (jnp.arange(T)[None, :] < lengths[:, None])[..., None]
    hs = jnp.where(mask, hs, 0.0)
    return hs @ wd.T + bd                                    # (B, T, V)


if __name__ == "__main__":
    vocab_size, rnn_size, embedding_size = 128, 64, 32
    B, T = 8, 8

    key = jax.random.PRNGKey(0)
    k_param, k_tok = jax.random.split(key)
    params = init_params(k_param, vocab_size, rnn_size, embedding_size)

    inputs = jax.random.randint(k_tok, (B, T), 0, vocab_size, dtype=jnp.int32)
    lengths = jnp.array([8, 5, 8, 3, 1, 7, 2, 6], dtype=jnp.int32)

    logits = lstm_lm_forward(inputs, lengths, params)
    jax.block_until_ready(logits)

    ref = lstm_lm_reference(inputs, lengths, params)
    assert logits.shape == (B, T, vocab_size)
    # Tolerance loosened vs the f32 reference because MXU operands are bf16
    # (f32 accumulation); drift at these sizes is ~1e-3, well inside 3e-2.
    assert jnp.allclose(logits, ref, atol=3e-2, rtol=3e-2), "mismatch vs reference"

    print("KERNEL_OK")
</pallas_src>

<mosaic_0001>
module attributes {stable_mosaic.version = 11 : i64} {
  func.func @matmul_bias_kernel(%arg0: i32, %arg1: i32, %arg2: memref<64x32xbf16, #tpu.memory_space<vmem>>, %arg3: memref<32x256xbf16, #tpu.memory_space<vmem>>, %arg4: memref<1x256xf32, #tpu.memory_space<vmem>>, %arg5: memref<64x256xf32, #tpu.memory_space<vmem>>) attributes {dimension_semantics = [#tpu.dimension_semantics<parallel>, #tpu.dimension_semantics<parallel>], iteration_bounds = array<i64: 1, 1>, scalar_prefetch = 0 : i64, scratch_operands = 0 : i64, tpu.core_type = #tpu.core_type<tc>, window_params = [{transform_indices = @transform_0, window_bounds = array<i64: 64, 32>}, {transform_indices = @transform_1, window_bounds = array<i64: 32, 256>}, {transform_indices = @transform_2, window_bounds = array<i64: 1, 256>}, {transform_indices = @transform_3, window_bounds = array<i64: 64, 256>}]} {
    %c0 = arith.constant 0 : index
    %c0_0 = arith.constant 0 : index
    %0 = vector.load %arg2[%c0, %c0_0] : memref<64x32xbf16, #tpu.memory_space<vmem>>, vector<64x32xbf16>
    %c0_1 = arith.constant 0 : index
    %c0_2 = arith.constant 0 : index
    %1 = vector.load %arg3[%c0_1, %c0_2] : memref<32x256xbf16, #tpu.memory_space<vmem>>, vector<32x256xbf16>
    %cst = arith.constant dense<0.000000e+00> : vector<64x256xf32>
    %2 = tpu.matmul %0, %1, %cst {dimension_numbers = #tpu.dot_dimension_numbers<[1], [0], [0], [1], [0, 0, 1, 1], [], []>} : vector<64x32xbf16>, vector<32x256xbf16>, vector<64x256xf32> -> vector<64x256xf32>
    %c0_3 = arith.constant 0 : index
    %c0_4 = arith.constant 0 : index
    %3 = vector.load %arg4[%c0_3, %c0_4] : memref<1x256xf32, #tpu.memory_space<vmem>>, vector<1x256xf32>
    %4 = vector.broadcast %3 : vector<1x256xf32> to vector<64x256xf32>
    %5 = arith.addf %2, %4 : vector<64x256xf32>
    %c0_5 = arith.constant 0 : index
    %c0_6 = arith.constant 0 : index
    %6 = vector.load %arg5[%c0_5, %c0_6] : memref<64x256xf32, #tpu.memory_space<vmem>>, vector<64x256xf32>
    tpu.vector_store %arg5[%c0_5, %c0_6], %5 {strides = array<i32>} : memref<64x256xf32, #tpu.memory_space<vmem>>, vector<64x256xf32>,
    return
  }
  func.func @transform_0(%arg0: i32, %arg1: i32) -> (i32, i32) {
    %c0_i32 = arith.constant 0 : i32
    %c0_i32_0 = arith.constant 0 : i32
    return %arg0, %c0_i32 : i32, i32
  }
  func.func @transform_1(%arg0: i32, %arg1: i32) -> (i32, i32) {
    %c0_i32 = arith.constant 0 : i32
    %c0_i32_0 = arith.constant 0 : i32
    return %c0_i32, %arg1 : i32, i32
  }
  func.func @transform_2(%arg0: i32, %arg1: i32) -> (i32, i32) {
    %c0_i32 = arith.constant 0 : i32
    %c0_i32_0 = arith.constant 0 : i32
    return %c0_i32, %arg1 : i32, i32
  }
  func.func @transform_3(%arg0: i32, %arg1: i32) -> (i32, i32) {
    %c0_i32 = arith.constant 0 : i32
    return %arg0, %arg1 : i32, i32
  }
}

</mosaic_0001>

<bundles_post_ra>
// kernel: tpu_custom_call.1
= control target key start
LH: loop header
LB: loop body
LE: loop exit
PB: predicated region body
PF: predicated region fallthrough
CT: control target
= control target key end

     0   :  { %v252_v2 = vmov 0   ;;  %vm80_vm0 = vcmask 261120   ;;  %s315_s0 = inlined_call_operand.vmem [shape: bf16[64,32], index: 0, kind: input, shape index: {}]   ;;  %s316_s1 = inlined_call_operand.vmem [shape: bf16[32,256], index: 1, kind: input, shape index: {}]   ;;  %s317_s2 = inlined_call_operand.vmem [shape: f32[1,256], index: 2, kind: input, shape index: {}]   ;;  %s318_s3 = inlined_call_operand.hbm [shape: f32[64,256], index: 3, kind: output, shape index: {}]  }
   0x1   :  { %v218_v0 = vld [vmem:[%s316_s1 + $0x4] ss:$8 sps:$4 sm:$0xff]   ;;  %v220_v1 = vld [vmem:[%s316_s1] ss:$8 sps:$4 sm:$0xff]   ;;  %125 = vmatprep.mubr.bf16.mxu0 %v252_v2  ;;  %145 = vmatprep.mubr.bf16.mxu1 %v252_v2  ;;  %v221_v3 = vld [vmem:[%s316_s1 + $0x14] ss:$8 sps:$4 sm:$0xff]  }
   0x2   :  { %93 = vmatprep.subr.bf16.mxu0 %v218_v0  ;;  %210 = vmatprep.subr.bf16.mxu1 %v218_v0  ;;  %v223_v4 = vld [vmem:[%s316_s1 + $0x10] ss:$8 sps:$4 sm:$0xff]   ;;  %v224_v5 = vld [vmem:[%s315_s0] sm:$0xff]  }
   0x3   :  { %94 = vmatpush1.bf16.msra.mxu0 %v220_v1  ;;  %212 = vmatpush1.bf16.msra.mxu1 %v220_v1  ;;  %v225_v6 = vld [vmem:[%s315_s0 + $0x10] sm:$0xff]  }
   0x4   :  { %95 = vmatprep.subr.bf16.mxu0 %v221_v3  ;;  %211 = vmatprep.subr.bf16.mxu1 %v221_v3 }
   0x7   :  { %96 = vmatpush1.bf16.msra.mxu0 %v223_v4  ;;  %213 = vmatpush1.bf16.msra.mxu1 %v223_v4 }
   0x8   :  { %8 = vsyncpa [#allocation3], 0  ;;  %v226_v7 = vld [vmem:[%s315_s0 + $0x8] sm:$0xff]   ;;  %v227_v8 = vld [vmem:[%s315_s0 + $0x18] sm:$0xff]   ;;  %v30_v9 = vlaneseq  ;;  %s253_s0 = smov [#allocation2]  }
   0x9   :  { %v28_v12 = vld [vmem:[%s317_s2] sm:$0x3]  ;;  %s187_s2 = sshll.u32 %s253_s0, 4  ;;  %s188_s2 = int_to_ptr.vmem [resolvable:$true] %s187_s2 }
   0xa   :  { %206 = vmatmul.mubr.msk.bf16.vlgmr.msra.gmra.mrb[0].mxu0 %vm80_vm0, %v224_v5  ;;  %208 = vmatmul.mubr.msk.bf16.vlgmr.msra.gmra.mrb[0].mxu1 %vm80_vm0, %v225_v6  ;;  %v31_v10 = vshrl.u32 %v30_v9, 7  ;;  %s228_s29 = scalar_lea.vmem %s188_s2, 2048  ;;  %p233_p1 = scmp.lt.s32.totalorder %s188_s2, %s188_s2 }
   0xb   :  { %135 = vmatprep.mubr.bf16.mxu0 %v252_v2  ;;  %155 = vmatprep.mubr.bf16.mxu1 %v252_v2  ;;  %p229_p0 = scmp.ne.s32.totalorder %s188_s2, %s228_s29  ;;  %p234_p2 = scmp.lt.s32.totalorder %s228_s29, %s228_s29 }
   0xc   :  { %v32_v11 = vsub.s32 0, %v31_v10  ;;  %v36_v13 = vsub.s32 1, %v31_v10 }
   0xd   :  { %p235_p3 = por %p234_p2, %p233_p1 }
   0xe   :  { %v33_v14 = vrot.slane %v28_v12, %v32_v11  ;;  %v37_v15 = vrot.slane %v28_v12, %v36_v13 }
   0xf   :  { %p236_p4 = pnand %p235_p3, %p229_p0 }
  0x12   :  { %207 = vmatmul.mubr.msk.bf16.gmra.mrb[4].mxu0 %vm80_vm0, %v226_v7  ;;  %209 = vmatmul.mubr.msk.bf16.gmra.mrb[4].mxu1 %vm80_vm0, %v227_v8 }
  0xdd   :  { %v127_v16 = vpop.f32.mrb[0].mxu0  ;;  %v147_v17 = vpop.f32.mrb[0].mxu1 }
  0xde   :  { %v128_v18 = vadd.f32 %v127_v16, %v33_v14  ;;  %v148_v19 = vadd.f32 %v147_v17, %v33_v14  ;;  %v129_v20 = vpop.f32.mrb[1].mxu0  ;;  %v149_v21 = vpop.f32.mrb[1].mxu1 }
  0xdf   :  { %v130_v22 = vadd.f32 %v129_v20, %v37_v15  ;;  %v150_v23 = vadd.f32 %v149_v21, %v37_v15  ;;  %v131_v24 = vpop.f32.mrb[2].mxu0  ;;  %v151_v25 = vpop.f32.mrb[2].mxu1 }
  0xe0   :  { %166 = vst [vmem:[#allocation2] sm:$0xff] %v128_v18  ;;  %174 = vst [vmem:[#allocation2 + $0x40] sm:$0xff] %v148_v19  ;;  %v132_v26 = vadd.f32 %v131_v24, %v33_v14  ;;  %v152_v27 = vadd.f32 %v151_v25, %v33_v14  ;;  %v133_v28 = vpop.f32.mrb[3].mxu0  ;;  %v153_v29 = vpop.f32.mrb[3].mxu1 }
  0xe1   :  { %167 = vst [vmem:[#allocation2 + $0x8] sm:$0xff] %v130_v22  ;;  %175 = vst [vmem:[#allocation2 + $0x48] sm:$0xff] %v150_v23  ;;  %v134_v30 = vadd.f32 %v133_v28, %v37_v15  ;;  %v154_v31 = vadd.f32 %v153_v29, %v37_v15 }
  0xe2   :  { %168 = vst [vmem:[#allocation2 + $0x10] sm:$0xff] %v132_v26  ;;  %176 = vst [vmem:[#allocation2 + $0x50] sm:$0xff] %v152_v27 }
  0xe3   :  { %169 = vst [vmem:[#allocation2 + $0x18] sm:$0xff] %v134_v30  ;;  %177 = vst [vmem:[#allocation2 + $0x58] sm:$0xff] %v154_v31 }
  0xe5   :  { %v137_v32 = vpop.f32.mrb[4].mxu0  ;;  %v157_v33 = vpop.f32.mrb[4].mxu1 }
  0xe6   :  { %v138_v34 = vadd.f32 %v137_v32, %v33_v14  ;;  %v158_v35 = vadd.f32 %v157_v33, %v33_v14  ;;  %v139_v36 = vpop.f32.mrb[5].mxu0  ;;  %v159_v37 = vpop.f32.mrb[5].mxu1 }
  0xe7   :  { %v140_v38 = vadd.f32 %v139_v36, %v37_v15  ;;  %v160_v39 = vadd.f32 %v159_v37, %v37_v15  ;;  %v141_v40 = vpop.f32.mrb[6].mxu0  ;;  %v161_v41 = vpop.f32.mrb[6].mxu1 }
  0xe8   :  { %170 = vst [vmem:[#allocation2 + $0x20] sm:$0xff] %v138_v34  ;;  %178 = vst [vmem:[#allocation2 + $0x60] sm:$0xff] %v158_v35  ;;  %v142_v42 = vadd.f32 %v141_v40, %v33_v14  ;;  %v162_v43 = vadd.f32 %v161_v41, %v33_v14  ;;  %v143_v44 = vpop.f32.mrb[7].mxu0  ;;  %v163_v45 = vpop.f32.mrb[7].mxu1 }
  0xe9   :  { %171 = vst [vmem:[#allocation2 + $0x28] sm:$0xff] %v140_v38  ;;  %179 = vst [vmem:[#allocation2 + $0x68] sm:$0xff] %v160_v39  ;;  %v144_v46 = vadd.f32 %v143_v44, %v37_v15  ;;  %v164_v47 = vadd.f32 %v163_v45, %v37_v15 }
  0xea   :  { %172 = vst [vmem:[#allocation2 + $0x30] sm:$0xff] %v142_v42  ;;  %180 = vst [vmem:[#allocation2 + $0x70] sm:$0xff] %v162_v43 }
  0xeb   :  { %173 = vst [vmem:[#allocation2 + $0x38] sm:$0xff] %v144_v46  ;;  %181 = vst [vmem:[#allocation2 + $0x78] sm:$0xff] %v164_v47 }
  0xec   :  { %239 = shalt.err (!%p236_p4)
}
  0xed   :  { %s240_s5 = scalar_lea.hbm %s318_s3, 2048 }
  0xee   :  { %p241_p5 = scmp.ne.s32.totalorder %s318_s3, %s240_s5  ;;  %p244_p6 = scmp.lt.u32.totalorder %s240_s5, %s318_s3 }
  0xf0   :  { %p246_p7 = pnand %p244_p6, %p241_p5 }
  0xf2   :  { %249 = shalt.err (!%p246_p7)
}
  0xf3   :  { %s254_s10 = smov 256   ;;  %s255_s11 = smov 16  }
  0xf4   :  { %193 = dma.vmem_to_hbm [thread:$0]  %s188_s2, 2048, %s318_s3, [#allocation3], %s254_s10, %s254_s10, %s255_s11  }
  0xf5   :  { %250 = dma.done.wait [#allocation3], 2048  }
  0xf6   :  { %251 = vsyncadd [#allocation3], 4294965248 }
  0xf7   :  { %197 = vsyncpa [#allocation3], 1 }

</bundles_post_ra>
